<compile_context>
chip_gen: v7x
topology: tpu7x:2x2x1
jax: 0.10.0
libtpu: 0.0.40
codegen_flags: <defaults>
</compile_context>

<pallas_src>
import functools

import jax
import jax.numpy as jnp
from jax.experimental import pallas as pl
from jax.experimental.pallas import tpu as pltpu

NEG_SLOPE = 0.01            # F.leaky_relu default negative_slope
BN_EPS = 1e-5               # nn.BatchNorm1d default eps
LANE = 128                  # vreg lane width
BF16_SUBLANES = 16          # bf16 packs 16 rows per vreg
EPILOGUE_CHUNK = 512        # lanes per bias/activation epilogue chunk
VMEM_LIMIT_BYTES = 32 * 1024 * 1024


def _round_up(n, m):
    return ((n + m - 1) // m) * m


# ----------------------------------------------------------------------------
# Single fused kernel: 5 x (matmul + bias [+ leaky_relu]), BN pre-folded.
# Weights stream HBM -> VMEM through a 2-slot manual double buffer.
# ----------------------------------------------------------------------------
def fused_mlp_kernel(x_ref,
                     w1_hbm, b1_ref, w2_hbm, b2_ref, w3_hbm, b3_ref,
                     w4_hbm, b4_ref, w5_hbm, b5_ref,
                     o_ref,
                     wbuf, dma_sems):
    w_hbm = (w1_hbm, w2_hbm, w3_hbm, w4_hbm, w5_hbm)
    b_refs = (b1_ref, b2_ref, b3_ref, b4_ref, b5_ref)
    n_layers = len(w_hbm)

    def weight_copy(i, slot):
        k, n = w_hbm[i].shape          # static, per-layer shaped copy
        return pltpu.make_async_copy(
            w_hbm[i], wbuf.at[slot, :k, :n], dma_sems.at[slot])

    # Prime the pipeline: start streaming W1 right away.
    weight_copy(0, 0).start()

    h = x_ref[...]                                            # bf16 (Bp, F0p)
    for i in range(n_layers):
        slot = i & 1
        # Prefetch next layer's weights; this DMA overlaps with layer-i compute.
        if i + 1 < n_layers:
            weight_copy(i + 1, 1 - slot).start()
        weight_copy(i, slot).wait()

        k, n = w_hbm[i].shape
        w_view = wbuf.at[slot]                                # VMEM view, no load
        last = (i == n_layers - 1)
        out_dtype = o_ref.dtype if last else jnp.bfloat16

        # Epilogue in <=512-lane chunks: bounds live f32 vregs, lets the VPU
        # epilogue of chunk j hide under MXU work of chunk j+1 at real sizes.
        chunks = []
        for c0 in range(0, n, EPILOGUE_CHUNK):
            cn = min(EPILOGUE_CHUNK, n - c0)
            y = jnp.dot(h, w_view[:k, c0:c0 + cn],
                        preferred_element_type=jnp.float32)   # MXU, f32 acc
            y = y + b_refs[i][:, c0:c0 + cn]                  # VPU bias
            if not last:
                y = jnp.where(y > 0, y, NEG_SLOPE * y)        # leaky_relu
            chunks.append(y.astype(out_dtype))
        z = chunks[0] if len(chunks) == 1 else jnp.concatenate(chunks, axis=-1)

        if last:
            o_ref[...] = z
        else:
            h = z

    # TODO(synk): training-mode dropout would need pltpu.prng_seed /
    # prng_random_bits in-kernel; eval-mode dropout is identity here.


def model_forward(x, layers, *, num_targets):
    """x:(B,Fin) f32; layers: list of 5 (W_t_padded bf16, b_padded (1,N) f32)."""
    B, fin = x.shape
    fin_pad = layers[0][0].shape[0]
    out_pad = layers[-1][0].shape[1]
    b_pad = _round_up(max(B, BF16_SUBLANES), BF16_SUBLANES)

    # Double-buffer sized for the largest padded weight (per review).
    k_max = max(w.shape[0] for w, _ in layers)
    n_max = max(w.shape[1] for w, _ in layers)

    # Pad batch + feature dims (padded weight rows/cols are zero so they
    # contribute nothing downstream); cast activations to bf16.  This pad is
    # fused by XLA inside the surrounding jit.
    x_p = jnp.zeros((b_pad, fin_pad), jnp.bfloat16)
    x_p = x_p.at[:B, :fin].set(x.astype(jnp.bfloat16))

    flat_params = [a for wb in layers for a in wb]

    in_specs = [pl.BlockSpec(memory_space=pltpu.MemorySpace.VMEM)]      # x
    for _ in layers:
        in_specs.append(pl.BlockSpec(memory_space=pl.ANY))               # W (HBM)
        in_specs.append(pl.BlockSpec(memory_space=pltpu.MemorySpace.VMEM))  # bias

    out = pl.pallas_call(
        fused_mlp_kernel,
        out_shape=jax.ShapeDtypeStruct((b_pad, out_pad), jnp.float32),
        in_specs=in_specs,
        out_specs=pl.BlockSpec(memory_space=pltpu.MemorySpace.VMEM),
        scratch_shapes=[
            pltpu.VMEM((2, k_max, n_max), jnp.bfloat16),   # weight double buffer
            pltpu.SemaphoreType.DMA((2,)),                 # one sem per slot
        ],
        compiler_params=pltpu.CompilerParams(
            vmem_limit_bytes=VMEM_LIMIT_BYTES,
        ),
    )(x_p, *flat_params)

    return out[:B, :num_targets]


# ----------------------------------------------------------------------------
# Parameter construction (deterministic, synthetic) + BN folding + padding
# ----------------------------------------------------------------------------
def make_bn_params(key, num_feat):
    """Return folded (scale, shift) for an eval-mode BatchNorm1d."""
    k1, k2, k3 = jax.random.split(key, 3)
    gamma = 1.0 + 0.1 * jax.random.normal(k1, (num_feat,), jnp.float32)
    beta = 0.1 * jax.random.normal(k2, (num_feat,), jnp.float32)
    running_mean = 0.1 * jax.random.normal(k3, (num_feat,), jnp.float32)
    running_var = jnp.ones((num_feat,), jnp.float32)
    scale = gamma / jnp.sqrt(running_var + BN_EPS)
    shift = beta - running_mean * scale
    return scale, shift


def make_linear_params(key, fin, fout):
    """Kaiming-uniform-ish deterministic init; return (W_t:(fin,fout), b:(fout,))."""
    kw, kb = jax.random.split(key)
    bound = 1.0 / jnp.sqrt(jnp.float32(fin))
    w = jax.random.uniform(kw, (fout, fin), jnp.float32, -bound, bound)   # torch layout
    b = jax.random.uniform(kb, (fout,), jnp.float32, -bound, bound)
    return w.T, b


def make_weight_norm_linear_params(key, fin, fout):
    """nn.utils.weight_norm(Linear): w = g * v / ||v||_row ; fold into W_t."""
    kv, kg, kb = jax.random.split(key, 3)
    bound = 1.0 / jnp.sqrt(jnp.float32(fin))
    v = jax.random.uniform(kv, (fout, fin), jnp.float32, -bound, bound)
    g = 1.0 + 0.1 * jax.random.normal(kg, (fout, 1), jnp.float32)
    b = jax.random.uniform(kb, (fout,), jnp.float32, -bound, bound)
    w = g * v / jnp.linalg.norm(v, axis=1, keepdims=True)
    return w.T, b


def fold_bn_and_pad(bn_scale, bn_shift, w_t, b, fin_pad, fout_pad):
    """Fold eval-mode BN into (W_t, b); zero-pad to lane-dense shapes; cast W to bf16."""
    # y = (x*scale + shift) @ W_t + b  ==  x @ (scale[:,None]*W_t) + (shift @ W_t + b)
    w_f = bn_scale[:, None] * w_t                       # (fin, fout) f32
    b_f = bn_shift @ w_t + b                            # (fout,)     f32
    fin, fout = w_t.shape
    w_p = jnp.zeros((fin_pad, fout_pad), jnp.bfloat16).at[:fin, :fout].set(
        w_f.astype(jnp.bfloat16))
    b_p = jnp.zeros((1, fout_pad), jnp.float32).at[0, :fout].set(b_f)
    return w_p, b_p


if __name__ == "__main__":
    # Small, forward-consistent shapes (scaled-down analogue of the real model).
    BATCH = 8
    NUM_FEATURES = 32
    NUM_TARGETS = 16
    HIDDEN = [128, 96, 64, 48]   # real model: [1500, 1250, 1000, 750]

    key = jax.random.PRNGKey(0)
    keys = jax.random.split(key, 16)

    dims = [NUM_FEATURES] + HIDDEN + [NUM_TARGETS]
    dims_pad = [_round_up(d, LANE) for d in dims]

    bn_keys = keys[0:5]
    lin_keys = keys[5:10]

    layers = []
    for i in range(5):
        bn_scale, bn_shift = make_bn_params(bn_keys[i], dims[i])
        if i < 4:
            w_t, b = make_linear_params(lin_keys[i], dims[i], dims[i + 1])
        else:
            # layer 5 is weight_norm(Linear), weights pre-normalized here.
            w_t, b = make_weight_norm_linear_params(lin_keys[i], dims[i], dims[i + 1])
        layers.append(fold_bn_and_pad(bn_scale, bn_shift, w_t, b,
                                      dims_pad[i], dims_pad[i + 1]))

    x = jax.random.normal(keys[10], (BATCH, NUM_FEATURES), jnp.float32)

    fwd = jax.jit(functools.partial(model_forward, num_targets=NUM_TARGETS))
    out = fwd(x, layers)
    out = jax.block_until_ready(out)
    assert out.shape == (BATCH, NUM_TARGETS), out.shape
    assert bool(jnp.all(jnp.isfinite(out)))

    print("KERNEL_OK")
</pallas_src>

<mosaic_0001>
module attributes {stable_mosaic.version = 11 : i64} {
  func.func @fused_mlp_kernel(%arg0: memref<16x128xbf16, #tpu.memory_space<vmem>>, %arg1: memref<128x128xbf16, #tpu.memory_space<any>>, %arg2: memref<1x128xf32, #tpu.memory_space<vmem>>, %arg3: memref<128x128xbf16, #tpu.memory_space<any>>, %arg4: memref<1x128xf32, #tpu.memory_space<vmem>>, %arg5: memref<128x128xbf16, #tpu.memory_space<any>>, %arg6: memref<1x128xf32, #tpu.memory_space<vmem>>, %arg7: memref<128x128xbf16, #tpu.memory_space<any>>, %arg8: memref<1x128xf32, #tpu.memory_space<vmem>>, %arg9: memref<128x128xbf16, #tpu.memory_space<any>>, %arg10: memref<1x128xf32, #tpu.memory_space<vmem>>, %arg11: memref<16x128xf32, #tpu.memory_space<vmem>>, %arg12: memref<2x128x128xbf16, #tpu.memory_space<vmem>>, %arg13: memref<2x!tpu.dma_semaphore, #tpu.memory_space<semaphore_mem>>) attributes {dimension_semantics = [], scalar_prefetch = 0 : i64, scratch_operands = 2 : i64, tpu.core_type = #tpu.core_type<tc>} {
    %c0_i32 = arith.constant 0 : i32
    %c0_i32_0 = arith.constant 0 : i32
    %c0_i32_1 = arith.constant 0 : i32
    %c0_i32_2 = arith.constant 0 : i32
    %0 = tpu.memref_slice %arg12[%c0_i32, %c0_i32_1, %c0_i32_2] : memref<2x128x128xbf16, #tpu.memory_space<vmem>> -> memref<1x128x128xbf16, #tpu.memory_space<vmem>>
    %1 = tpu.memref_squeeze %0 : memref<1x128x128xbf16, #tpu.memory_space<vmem>> -> memref<128x128xbf16, #tpu.memory_space<vmem>>
    %2 = tpu.memref_slice %arg13[%c0_i32_0] : memref<2x!tpu.dma_semaphore, #tpu.memory_space<semaphore_mem>> -> memref<1x!tpu.dma_semaphore, #tpu.memory_space<semaphore_mem>>
    %3 = tpu.memref_squeeze %2 : memref<1x!tpu.dma_semaphore, #tpu.memory_space<semaphore_mem>> -> memref<!tpu.dma_semaphore, #tpu.memory_space<semaphore_mem>>
    tpu.enqueue_dma source(%arg1 : memref<128x128xbf16, #tpu.memory_space<any>>) target(%1 : memref<128x128xbf16, #tpu.memory_space<vmem>>) target_semaphore(%3 : memref<!tpu.dma_semaphore, #tpu.memory_space<semaphore_mem>>)
    %c0 = arith.constant 0 : index
    %c0_3 = arith.constant 0 : index
    %4 = vector.load %arg0[%c0, %c0_3] : memref<16x128xbf16, #tpu.memory_space<vmem>>, vector<16x128xbf16>
    %c1_i32 = arith.constant 1 : i32
    %c1_i32_4 = arith.constant 1 : i32
    %c0_i32_5 = arith.constant 0 : i32
    %c0_i32_6 = arith.constant 0 : i32
    %5 = tpu.memref_slice %arg12[%c1_i32, %c0_i32_5, %c0_i32_6] : memref<2x128x128xbf16, #tpu.memory_space<vmem>> -> memref<1x128x128xbf16, #tpu.memory_space<vmem>>
    %6 = tpu.memref_squeeze %5 : memref<1x128x128xbf16, #tpu.memory_space<vmem>> -> memref<128x128xbf16, #tpu.memory_space<vmem>>
    %7 = tpu.memref_slice %arg13[%c1_i32_4] : memref<2x!tpu.dma_semaphore, #tpu.memory_space<semaphore_mem>> -> memref<1x!tpu.dma_semaphore, #tpu.memory_space<semaphore_mem>>
    %8 = tpu.memref_squeeze %7 : memref<1x!tpu.dma_semaphore, #tpu.memory_space<semaphore_mem>> -> memref<!tpu.dma_semaphore, #tpu.memory_space<semaphore_mem>>
    tpu.enqueue_dma source(%arg3 : memref<128x128xbf16, #tpu.memory_space<any>>) target(%6 : memref<128x128xbf16, #tpu.memory_space<vmem>>) target_semaphore(%8 : memref<!tpu.dma_semaphore, #tpu.memory_space<semaphore_mem>>)
    %c0_i32_7 = arith.constant 0 : i32
    %c0_i32_8 = arith.constant 0 : i32
    %c0_i32_9 = arith.constant 0 : i32
    %c0_i32_10 = arith.constant 0 : i32
    %9 = tpu.memref_slice %arg12[%c0_i32_7, %c0_i32_9, %c0_i32_10] : memref<2x128x128xbf16, #tpu.memory_space<vmem>> -> memref<1x128x128xbf16, #tpu.memory_space<vmem>>
    %10 = tpu.memref_squeeze %9 : memref<1x128x128xbf16, #tpu.memory_space<vmem>> -> memref<128x128xbf16, #tpu.memory_space<vmem>>
    %11 = tpu.memref_slice %arg13[%c0_i32_8] : memref<2x!tpu.dma_semaphore, #tpu.memory_space<semaphore_mem>> -> memref<1x!tpu.dma_semaphore, #tpu.memory_space<semaphore_mem>>
    %12 = tpu.memref_squeeze %11 : memref<1x!tpu.dma_semaphore, #tpu.memory_space<semaphore_mem>> -> memref<!tpu.dma_semaphore, #tpu.memory_space<semaphore_mem>>
    tpu.wait_dma2 semaphore(%12 : memref<!tpu.dma_semaphore, #tpu.memory_space<semaphore_mem>>) src(%arg1 : memref<128x128xbf16, #tpu.memory_space<any>>) dst(%10 : memref<128x128xbf16, #tpu.memory_space<vmem>>)
    %c0_i32_11 = arith.constant 0 : i32
    %c0_i32_12 = arith.constant 0 : i32
    %c0_i32_13 = arith.constant 0 : i32
    %13 = tpu.memref_slice %arg12[%c0_i32_11, %c0_i32_12, %c0_i32_13] : memref<2x128x128xbf16, #tpu.memory_space<vmem>> -> memref<1x128x128xbf16, #tpu.memory_space<vmem>>
    %14 = tpu.memref_squeeze %13 : memref<1x128x128xbf16, #tpu.memory_space<vmem>> -> memref<128x128xbf16, #tpu.memory_space<vmem>>
    %c0_14 = arith.constant 0 : index
    %c0_15 = arith.constant 0 : index
    %15 = vector.load %14[%c0_14, %c0_15] : memref<128x128xbf16, #tpu.memory_space<vmem>>, vector<128x128xbf16>
    %cst = arith.constant dense<0.000000e+00> : vector<16x128xf32>
    %16 = tpu.matmul %4, %15, %cst {dimension_numbers = #tpu.dot_dimension_numbers<[1], [0], [0], [1], [0, 0, 1, 1], [], []>} : vector<16x128xbf16>, vector<128x128xbf16>, vector<16x128xf32> -> vector<16x128xf32>
    %c0_16 = arith.constant 0 : index
    %c0_17 = arith.constant 0 : index
    %17 = vector.load %arg2[%c0_16, %c0_17] : memref<1x128xf32, #tpu.memory_space<vmem>>, vector<1x128xf32>
    %18 = vector.broadcast %17 : vector<1x128xf32> to vector<16x128xf32>
    %19 = arith.addf %16, %18 : vector<16x128xf32>
    %cst_18 = arith.constant 0.000000e+00 : f32
    %20 = vector.broadcast %cst_18 : f32 to vector<16x128xf32>
    %21 = arith.cmpf ogt, %19, %20 : vector<16x128xf32>
    %cst_19 = arith.constant 0.00999999977 : f32
    %22 = vector.broadcast %cst_19 : f32 to vector<16x128xf32>
    %23 = arith.mulf %22, %19 : vector<16x128xf32>
    %24 = arith.select %21, %19, %23 : vector<16x128xi1>, vector<16x128xf32>
    %25 = arith.truncf %24 : vector<16x128xf32> to vector<16x128xbf16>
    %c0_i32_20 = arith.constant 0 : i32
    %c0_i32_21 = arith.constant 0 : i32
    %c0_i32_22 = arith.constant 0 : i32
    %c0_i32_23 = arith.constant 0 : i32
    %26 = tpu.memref_slice %arg12[%c0_i32_20, %c0_i32_22, %c0_i32_23] : memref<2x128x128xbf16, #tpu.memory_space<vmem>> -> memref<1x128x128xbf16, #tpu.memory_space<vmem>>
    %27 = tpu.memref_squeeze %26 : memref<1x128x128xbf16, #tpu.memory_space<vmem>> -> memref<128x128xbf16, #tpu.memory_space<vmem>>
    %28 = tpu.memref_slice %arg13[%c0_i32_21] : memref<2x!tpu.dma_semaphore, #tpu.memory_space<semaphore_mem>> -> memref<1x!tpu.dma_semaphore, #tpu.memory_space<semaphore_mem>>
    %29 = tpu.memref_squeeze %28 : memref<1x!tpu.dma_semaphore, #tpu.memory_space<semaphore_mem>> -> memref<!tpu.dma_semaphore, #tpu.memory_space<semaphore_mem>>
    tpu.enqueue_dma source(%arg5 : memref<128x128xbf16, #tpu.memory_space<any>>) target(%27 : memref<128x128xbf16, #tpu.memory_space<vmem>>) target_semaphore(%29 : memref<!tpu.dma_semaphore, #tpu.memory_space<semaphore_mem>>)
    %c1_i32_24 = arith.constant 1 : i32
    %c1_i32_25 = arith.constant 1 : i32
    %c0_i32_26 = arith.constant 0 : i32
    %c0_i32_27 = arith.constant 0 : i32
    %30 = tpu.memref_slice %arg12[%c1_i32_24, %c0_i32_26, %c0_i32_27] : memref<2x128x128xbf16, #tpu.memory_space<vmem>> -> memref<1x128x128xbf16, #tpu.memory_space<vmem>>
    %31 = tpu.memref_squeeze %30 : memref<1x128x128xbf16, #tpu.memory_space<vmem>> -> memref<128x128xbf16, #tpu.memory_space<vmem>>
    %32 = tpu.memref_slice %arg13[%c1_i32_25] : memref<2x!tpu.dma_semaphore, #tpu.memory_space<semaphore_mem>> -> memref<1x!tpu.dma_semaphore, #tpu.memory_space<semaphore_mem>>
    %33 = tpu.memref_squeeze %32 : memref<1x!tpu.dma_semaphore, #tpu.memory_space<semaphore_mem>> -> memref<!tpu.dma_semaphore, #tpu.memory_space<semaphore_mem>>
    tpu.wait_dma2 semaphore(%33 : memref<!tpu.dma_semaphore, #tpu.memory_space<semaphore_mem>>) src(%arg3 : memref<128x128xbf16, #tpu.memory_space<any>>) dst(%31 : memref<128x128xbf16, #tpu.memory_space<vmem>>)
    %c1_i32_28 = arith.constant 1 : i32
    %c0_i32_29 = arith.constant 0 : i32
    %c0_i32_30 = arith.constant 0 : i32
    %34 = tpu.memref_slice %arg12[%c1_i32_28, %c0_i32_29, %c0_i32_30] : memref<2x128x128xbf16, #tpu.memory_space<vmem>> -> memref<1x128x128xbf16, #tpu.memory_space<vmem>>
    %35 = tpu.memref_squeeze %34 : memref<1x128x128xbf16, #tpu.memory_space<vmem>> -> memref<128x128xbf16, #tpu.memory_space<vmem>>
    %c0_31 = arith.constant 0 : index
    %c0_32 = arith.constant 0 : index
    %36 = vector.load %35[%c0_31, %c0_32] : memref<128x128xbf16, #tpu.memory_space<vmem>>, vector<128x128xbf16>
    %cst_33 = arith.constant dense<0.000000e+00> : vector<16x128xf32>
    %37 = tpu.matmul %25, %36, %cst_33 {dimension_numbers = #tpu.dot_dimension_numbers<[1], [0], [0], [1], [0, 0, 1, 1], [], []>} : vector<16x128xbf16>, vector<128x128xbf16>, vector<16x128xf32> -> vector<16x128xf32>
    %c0_34 = arith.constant 0 : index
    %c0_35 = arith.constant 0 : index
    %38 = vector.load %arg4[%c0_34, %c0_35] : memref<1x128xf32, #tpu.memory_space<vmem>>, vector<1x128xf32>
    %39 = vector.broadcast %38 : vector<1x128xf32> to vector<16x128xf32>
    %40 = arith.addf %37, %39 : vector<16x128xf32>
    %cst_36 = arith.constant 0.000000e+00 : f32
    %41 = vector.broadcast %cst_36 : f32 to vector<16x128xf32>
    %42 = arith.cmpf ogt, %40, %41 : vector<16x128xf32>
    %cst_37 = arith.constant 0.00999999977 : f32
    %43 = vector.broadcast %cst_37 : f32 to vector<16x128xf32>
    %44 = arith.mulf %43, %40 : vector<16x128xf32>
    %45 = arith.select %42, %40, %44 : vector<16x128xi1>, vector<16x128xf32>
    %46 = arith.truncf %45 : vector<16x128xf32> to vector<16x128xbf16>
    %c1_i32_38 = arith.constant 1 : i32
    %c1_i32_39 = arith.constant 1 : i32
    %c0_i32_40 = arith.constant 0 : i32
    %c0_i32_41 = arith.constant 0 : i32
    %47 = tpu.memref_slice %arg12[%c1_i32_38, %c0_i32_40, %c0_i32_41] : memref<2x128x128xbf16, #tpu.memory_space<vmem>> -> memref<1x128x128xbf16, #tpu.memory_space<vmem>>
    %48 = tpu.memref_squeeze %47 : memref<1x128x128xbf16, #tpu.memory_space<vmem>> -> memref<128x128xbf16, #tpu.memory_space<vmem>>
    %49 = tpu.memref_slice %arg13[%c1_i32_39] : memref<2x!tpu.dma_semaphore, #tpu.memory_space<semaphore_mem>> -> memref<1x!tpu.dma_semaphore, #tpu.memory_space<semaphore_mem>>
    %50 = tpu.memref_squeeze %49 : memref<1x!tpu.dma_semaphore, #tpu.memory_space<semaphore_mem>> -> memref<!tpu.dma_semaphore, #tpu.memory_space<semaphore_mem>>
    tpu.enqueue_dma source(%arg7 : memref<128x128xbf16, #tpu.memory_space<any>>) target(%48 : memref<128x128xbf16, #tpu.memory_space<vmem>>) target_semaphore(%50 : memref<!tpu.dma_semaphore, #tpu.memory_space<semaphore_mem>>)
    %c0_i32_42 = arith.constant 0 : i32
    %c0_i32_43 = arith.constant 0 : i32
    %c0_i32_44 = arith.constant 0 : i32
    %c0_i32_45 = arith.constant 0 : i32
    %51 = tpu.memref_slice %arg12[%c0_i32_42, %c0_i32_44, %c0_i32_45] : memref<2x128x128xbf16, #tpu.memory_space<vmem>> -> memref<1x128x128xbf16, #tpu.memory_space<vmem>>
    %52 = tpu.memref_squeeze %51 : memref<1x128x128xbf16, #tpu.memory_space<vmem>> -> memref<128x128xbf16, #tpu.memory_space<vmem>>
    %53 = tpu.memref_slice %arg13[%c0_i32_43] : memref<2x!tpu.dma_semaphore, #tpu.memory_space<semaphore_mem>> -> memref<1x!tpu.dma_semaphore, #tpu.memory_space<semaphore_mem>>
    %54 = tpu.memref_squeeze %53 : memref<1x!tpu.dma_semaphore, #tpu.memory_space<semaphore_mem>> -> memref<!tpu.dma_semaphore, #tpu.memory_space<semaphore_mem>>
    tpu.wait_dma2 semaphore(%54 : memref<!tpu.dma_semaphore, #tpu.memory_space<semaphore_mem>>) src(%arg5 : memref<128x128xbf16, #tpu.memory_space<any>>) dst(%52 : memref<128x128xbf16, #tpu.memory_space<vmem>>)
    %c0_i32_46 = arith.constant 0 : i32
    %c0_i32_47 = arith.constant 0 : i32
    %c0_i32_48 = arith.constant 0 : i32
    %55 = tpu.memref_slice %arg12[%c0_i32_46, %c0_i32_47, %c0_i32_48] : memref<2x128x128xbf16, #tpu.memory_space<vmem>> -> memref<1x128x128xbf16, #tpu.memory_space<vmem>>
    %56 = tpu.memref_squeeze %55 : memref<1x128x128xbf16, #tpu.memory_space<vmem>> -> memref<128x128xbf16, #tpu.memory_space<vmem>>
    %c0_49 = arith.constant 0 : index
    %c0_50 = arith.constant 0 : index
    %57 = vector.load %56[%c0_49, %c0_50] : memref<128x128xbf16, #tpu.memory_space<vmem>>, vector<128x128xbf16>
    %cst_51 = arith.constant dense<0.000000e+00> : vector<16x128xf32>
    %58 = tpu.matmul %46, %57, %cst_51 {dimension_numbers = #tpu.dot_dimension_numbers<[1], [0], [0], [1], [0, 0, 1, 1], [], []>} : vector<16x128xbf16>, vector<128x128xbf16>, vector<16x128xf32> -> vector<16x128xf32>
    %c0_52 = arith.constant 0 : index
    %c0_53 = arith.constant 0 : index
    %59 = vector.load %arg6[%c0_52, %c0_53] : memref<1x128xf32, #tpu.memory_space<vmem>>, vector<1x128xf32>
    %60 = vector.broadcast %59 : vector<1x128xf32> to vector<16x128xf32>
    %61 = arith.addf %58, %60 : vector<16x128xf32>
    %cst_54 = arith.constant 0.000000e+00 : f32
    %62 = vector.broadcast %cst_54 : f32 to vector<16x128xf32>
    %63 = arith.cmpf ogt, %61, %62 : vector<16x128xf32>
    %cst_55 = arith.constant 0.00999999977 : f32
    %64 = vector.broadcast %cst_55 : f32 to vector<16x128xf32>
    %65 = arith.mulf %64, %61 : vector<16x128xf32>
    %66 = arith.select %63, %61, %65 : vector<16x128xi1>, vector<16x128xf32>
    %67 = arith.truncf %66 : vector<16x128xf32> to vector<16x128xbf16>
    %c0_i32_56 = arith.constant 0 : i32
    %c0_i32_57 = arith.constant 0 : i32
    %c0_i32_58 = arith.constant 0 : i32
    %c0_i32_59 = arith.constant 0 : i32
    %68 = tpu.memref_slice %arg12[%c0_i32_56, %c0_i32_58, %c0_i32_59] : memref<2x128x128xbf16, #tpu.memory_space<vmem>> -> memref<1x128x128xbf16, #tpu.memory_space<vmem>>
    %69 = tpu.memref_squeeze %68 : memref<1x128x128xbf16, #tpu.memory_space<vmem>> -> memref<128x128xbf16, #tpu.memory_space<vmem>>
    %70 = tpu.memref_slice %arg13[%c0_i32_57] : memref<2x!tpu.dma_semaphore, #tpu.memory_space<semaphore_mem>> -> memref<1x!tpu.dma_semaphore, #tpu.memory_space<semaphore_mem>>
    %71 = tpu.memref_squeeze %70 : memref<1x!tpu.dma_semaphore, #tpu.memory_space<semaphore_mem>> -> memref<!tpu.dma_semaphore, #tpu.memory_space<semaphore_mem>>
    tpu.enqueue_dma source(%arg9 : memref<128x128xbf16, #tpu.memory_space<any>>) target(%69 : memref<128x128xbf16, #tpu.memory_space<vmem>>) target_semaphore(%71 : memref<!tpu.dma_semaphore, #tpu.memory_space<semaphore_mem>>)
    %c1_i32_60 = arith.constant 1 : i32
    %c1_i32_61 = arith.constant 1 : i32
    %c0_i32_62 = arith.constant 0 : i32
    %c0_i32_63 = arith.constant 0 : i32
    %72 = tpu.memref_slice %arg12[%c1_i32_60, %c0_i32_62, %c0_i32_63] : memref<2x128x128xbf16, #tpu.memory_space<vmem>> -> memref<1x128x128xbf16, #tpu.memory_space<vmem>>
    %73 = tpu.memref_squeeze %72 : memref<1x128x128xbf16, #tpu.memory_space<vmem>> -> memref<128x128xbf16, #tpu.memory_space<vmem>>
    %74 = tpu.memref_slice %arg13[%c1_i32_61] : memref<2x!tpu.dma_semaphore, #tpu.memory_space<semaphore_mem>> -> memref<1x!tpu.dma_semaphore, #tpu.memory_space<semaphore_mem>>
    %75 = tpu.memref_squeeze %74 : memref<1x!tpu.dma_semaphore, #tpu.memory_space<semaphore_mem>> -> memref<!tpu.dma_semaphore, #tpu.memory_space<semaphore_mem>>
    tpu.wait_dma2 semaphore(%75 : memref<!tpu.dma_semaphore, #tpu.memory_space<semaphore_mem>>) src(%arg7 : memref<128x128xbf16, #tpu.memory_space<any>>) dst(%73 : memref<128x128xbf16, #tpu.memory_space<vmem>>)
    %c1_i32_64 = arith.constant 1 : i32
    %c0_i32_65 = arith.constant 0 : i32
    %c0_i32_66 = arith.constant 0 : i32
    %76 = tpu.memref_slice %arg12[%c1_i32_64, %c0_i32_65, %c0_i32_66] : memref<2x128x128xbf16, #tpu.memory_space<vmem>> -> memref<1x128x128xbf16, #tpu.memory_space<vmem>>
    %77 = tpu.memref_squeeze %76 : memref<1x128x128xbf16, #tpu.memory_space<vmem>> -> memref<128x128xbf16, #tpu.memory_space<vmem>>
    %c0_67 = arith.constant 0 : index
    %c0_68 = arith.constant 0 : index
    %78 = vector.load %77[%c0_67, %c0_68] : memref<128x128xbf16, #tpu.memory_space<vmem>>, vector<128x128xbf16>
    %cst_69 = arith.constant dense<0.000000e+00> : vector<16x128xf32>
    %79 = tpu.matmul %67, %78, %cst_69 {dimension_numbers = #tpu.dot_dimension_numbers<[1], [0], [0], [1], [0, 0, 1, 1], [], []>} : vector<16x128xbf16>, vector<128x128xbf16>, vector<16x128xf32> -> vector<16x128xf32>
    %c0_70 = arith.constant 0 : index
    %c0_71 = arith.constant 0 : index
    %80 = vector.load %arg8[%c0_70, %c0_71] : memref<1x128xf32, #tpu.memory_space<vmem>>, vector<1x128xf32>
    %81 = vector.broadcast %80 : vector<1x128xf32> to vector<16x128xf32>
    %82 = arith.addf %79, %81 : vector<16x128xf32>
    %cst_72 = arith.constant 0.000000e+00 : f32
    %83 = vector.broadcast %cst_72 : f32 to vector<16x128xf32>
    %84 = arith.cmpf ogt, %82, %83 : vector<16x128xf32>
    %cst_73 = arith.constant 0.00999999977 : f32
    %85 = vector.broadcast %cst_73 : f32 to vector<16x128xf32>
    %86 = arith.mulf %85, %82 : vector<16x128xf32>
    %87 = arith.select %84, %82, %86 : vector<16x128xi1>, vector<16x128xf32>
    %88 = arith.truncf %87 : vector<16x128xf32> to vector<16x128xbf16>
    %c0_i32_74 = arith.constant 0 : i32
    %c0_i32_75 = arith.constant 0 : i32
    %c0_i32_76 = arith.constant 0 : i32
    %c0_i32_77 = arith.constant 0 : i32
    %89 = tpu.memref_slice %arg12[%c0_i32_74, %c0_i32_76, %c0_i32_77] : memref<2x128x128xbf16, #tpu.memory_space<vmem>> -> memref<1x128x128xbf16, #tpu.memory_space<vmem>>
    %90 = tpu.memref_squeeze %89 : memref<1x128x128xbf16, #tpu.memory_space<vmem>> -> memref<128x128xbf16, #tpu.memory_space<vmem>>
    %91 = tpu.memref_slice %arg13[%c0_i32_75] : memref<2x!tpu.dma_semaphore, #tpu.memory_space<semaphore_mem>> -> memref<1x!tpu.dma_semaphore, #tpu.memory_space<semaphore_mem>>
    %92 = tpu.memref_squeeze %91 : memref<1x!tpu.dma_semaphore, #tpu.memory_space<semaphore_mem>> -> memref<!tpu.dma_semaphore, #tpu.memory_space<semaphore_mem>>
    tpu.wait_dma2 semaphore(%92 : memref<!tpu.dma_semaphore, #tpu.memory_space<semaphore_mem>>) src(%arg9 : memref<128x128xbf16, #tpu.memory_space<any>>) dst(%90 : memref<128x128xbf16, #tpu.memory_space<vmem>>)
    %c0_i32_78 = arith.constant 0 : i32
    %c0_i32_79 = arith.constant 0 : i32
    %c0_i32_80 = arith.constant 0 : i32
    %93 = tpu.memref_slice %arg12[%c0_i32_78, %c0_i32_79, %c0_i32_80] : memref<2x128x128xbf16, #tpu.memory_space<vmem>> -> memref<1x128x128xbf16, #tpu.memory_space<vmem>>
    %94 = tpu.memref_squeeze %93 : memref<1x128x128xbf16, #tpu.memory_space<vmem>> -> memref<128x128xbf16, #tpu.memory_space<vmem>>
    %c0_81 = arith.constant 0 : index
    %c0_82 = arith.constant 0 : index
    %95 = vector.load %94[%c0_81, %c0_82] : memref<128x128xbf16, #tpu.memory_space<vmem>>, vector<128x128xbf16>
    %cst_83 = arith.constant dense<0.000000e+00> : vector<16x128xf32>
    %96 = tpu.matmul %88, %95, %cst_83 {dimension_numbers = #tpu.dot_dimension_numbers<[1], [0], [0], [1], [0, 0, 1, 1], [], []>} : vector<16x128xbf16>, vector<128x128xbf16>, vector<16x128xf32> -> vector<16x128xf32>
    %c0_84 = arith.constant 0 : index
    %c0_85 = arith.constant 0 : index
    %97 = vector.load %arg10[%c0_84, %c0_85] : memref<1x128xf32, #tpu.memory_space<vmem>>, vector<1x128xf32>
    %98 = vector.broadcast %97 : vector<1x128xf32> to vector<16x128xf32>
    %99 = arith.addf %96, %98 : vector<16x128xf32>
    %c0_86 = arith.constant 0 : index
    %c0_87 = arith.constant 0 : index
    %100 = vector.load %arg11[%c0_86, %c0_87] : memref<16x128xf32, #tpu.memory_space<vmem>>, vector<16x128xf32>
    tpu.vector_store %arg11[%c0_86, %c0_87], %99 {strides = array<i32>} : memref<16x128xf32, #tpu.memory_space<vmem>>, vector<16x128xf32>,
    return
  }
}

</mosaic_0001>

<bundles_post_ra>
// kernel: model_forward.1
= control target key start
LH: loop header
LB: loop body
LE: loop exit
PB: predicated region body
PF: predicated region fallthrough
CT: control target
= control target key end

     0   :  { %s710_s17 = smov [#allocation2]   ;;  %s711_s23 = smov [#allocation2 + $0x40]   ;;  %s967_s0 = inlined_call_operand.vmem [shape: bf16[16,128], index: 0, kind: input, shape index: {}]   ;;  %s968_s1 = inlined_call_operand.hbm [shape: bf16[128,128], index: 1, kind: input, shape index: {}]   ;;  %s969_s2 = inlined_call_operand.vmem [shape: f32[1,128], index: 2, kind: input, shape index: {}]   ;;  %s970_s4 = inlined_call_operand.vmem [shape: f32[1,128], index: 4, kind: input, shape index: {}]   ;;  %s971_s5 = inlined_call_operand.hbm [shape: bf16[128,128], index: 5, kind: input, shape index: {}]   ;;  %s972_s6 = inlined_call_operand.vmem [shape: f32[1,128], index: 6, kind: input, shape index: {}]   ;;  %s973_s7 = inlined_call_operand.hbm [shape: bf16[128,128], index: 7, kind: input, shape index: {}]   ;;  %s974_s8 = inlined_call_operand.vmem [shape: f32[1,128], index: 8, kind: input, shape index: {}]   ;;  %s975_s9 = inlined_call_operand.hbm [shape: bf16[128,128], index: 9, kind: input, shape index: {}]   ;;  %s976_s10 = inlined_call_operand.vmem [shape: f32[1,128], index: 10, kind: input, shape index: {}]   ;;  %s977_s11 = inlined_call_operand.vmem [shape: f32[16,128], index: 11, kind: output, shape index: {}]   ;;  %s978_s3 = inlined_call_operand.hbm [shape: bf16[128,128], index: 3, kind: input, shape index: {}]  }
   0x1   :  { %s36_s18 = sshll.u32 %s710_s17, 4  ;;  %v777_v0 = vld [vmem:[%s967_s0] sm:$0xf]  ;;  %v782_v1 = vld [vmem:[%s967_s0 + $0x4] sm:$0xf]  ;;  %s51_s24 = sshll.u32 %s711_s23, 4  ;;  %s784_s18 = int_to_ptr.vmem [resolvable:$true] %s36_s18  ;;  %s786_s24 = int_to_ptr.vmem [resolvable:$true] %s51_s24 }
   0x2   :  { %s590_s27 = scalar_lea.hbm %s968_s1, 1024 }
   0x3   :  { %p591_p0 = scmp.ne.s32.totalorder %s968_s1, %s590_s27  ;;  %p594_p1 = scmp.lt.u32.totalorder %s590_s27, %s968_s1 }
   0x5   :  { %p596_p2 = pnand %p594_p1, %p591_p0 }
   0x7   :  { %599 = shalt.err (!%p596_p2)  }
   0x8   :  { %s600_s0 = scalar_lea.vmem %s784_s18, 1024  ;;  %s604_s13 = scalar_lea.vmem %s784_s18, 2048 }
   0x9   :  { %p601_p3 = scmp.ne.s32.totalorder %s784_s18, %s600_s0  ;;  %p605_p4 = scmp.lt.s32.totalorder %s784_s18, %s784_s18 }
   0xa   :  { %p606_p5 = scmp.lt.s32.totalorder %s604_s13, %s600_s0 }
   0xc   :  { %p607_p6 = por %p606_p5, %p605_p4 }
   0xe   :  { %p802_p7 = pnand %p607_p6, %p601_p3 }
  0x10   :  { %611 = shalt.err (!%p802_p7)  }
  0x11   :  { %39 = dma.hbm_to_vmem [thread:$0]  %s968_s1, 1024, %s784_s18, [#allocation3] }
  0x12   :  { %s612_s20 = scalar_lea.hbm %s978_s3, 1024 }
  0x13   :  { %p613_p8 = scmp.ne.s32.totalorder %s978_s3, %s612_s20  ;;  %p616_p9 = scmp.lt.u32.totalorder %s612_s20, %s978_s3 }
  0x15   :  { %p618_p10 = pnand %p616_p9, %p613_p8 }
  0x17   :  { %621 = shalt.err (!%p618_p10)  }
  0x18   :  { %s622_s26 = scalar_lea.vmem %s786_s24, 1024  ;;  %p627_p12 = scmp.lt.s32.totalorder %s786_s24, %s784_s18 }
  0x19   :  { %p823_p11 = scmp.ne.s32.totalorder %s786_s24, %s622_s26  ;;  %p628_p13 = scmp.lt.s32.totalorder %s604_s13, %s622_s26 }
  0x1b   :  { %p829_p0 = por %p628_p13, %p627_p12 }
  0x1d   :  { %p630_p1 = pnand %p829_p0, %p823_p11 }
  0x1f   :  { %633 = shalt.err (!%p630_p1)  }
  0x20   :  { %54 = dma.hbm_to_vmem [thread:$0]  %s978_s3, 1024, %s786_s24, [#allocation3 + $0x1] }
  0x21   :  { %700 = dma.done.wait [#allocation3], 1024 }
  0x22   :  { %701 = vsyncadd [#allocation3], 4294966272  ;;  %v712_v2 = vmov 0.0   ;;  %vm713_vm0 = vmmov 0   ;;  %v59_v3 = vld [vmem:[#allocation2] sm:$0xff]  ;;  %v60_v4 = vld [vmem:[#allocation2 + $0x8] sm:$0xff] }
  0x23   :  { %486 = vmatprep.subr.bf16.mxu0 %v712_v2  ;;  %502 = vmatprep.mubr.msk.bf16.mxu0 %vm713_vm0, %v712_v2  ;;  %v61_v5 = vld [vmem:[#allocation2 + $0x10] sm:$0xff]  ;;  %v62_v6 = vld [vmem:[#allocation2 + $0x18] sm:$0xff]  ;;  %v63_v7 = vld [vmem:[#allocation2 + $0x20] sm:$0xff]  ;;  %s634_s12 = scalar_lea.hbm %s971_s5, 1024 }
  0x24   :  { %487 = vmatpush3.bf16.msra.mxu0 %v59_v3  ;;  %v64_v8 = vld [vmem:[#allocation2 + $0x28] sm:$0xff]  ;;  %v65_v9 = vld [vmem:[#allocation2 + $0x30] sm:$0xff]  ;;  %v66_v10 = vld [vmem:[#allocation2 + $0x38] sm:$0xff]  ;;  %p635_p2 = scmp.ne.s32.totalorder %s971_s5, %s634_s12  ;;  %p638_p3 = scmp.lt.u32.totalorder %s634_s12, %s971_s5 }
  0x25   :  { %488 = vmatprep.subr.bf16.mxu0 %v712_v2 }
  0x26   :  { %p640_p4 = pnand %p638_p3, %p635_p2 }
  0x28   :  { %643 = shalt.err (!%p640_p4)  }
  0x29   :  { %655 = shalt.err (!%p802_p7)  }
  0x2a   :  { %138 = dma.hbm_to_vmem [thread:$0]  %s971_s5, 1024, %s784_s18, [#allocation3]  ;;  %489 = vmatpush3.bf16.msra.mxu0 %v60_v4  ;;  %v434_v11 = vcombine.low %v777_v0, %v782_v1  ;;  %v433_v12 = vld [vmem:[%s969_s2] ss:$0 sm:$0xff] }
  0x2b   :  { %490 = vmatprep.subr.bf16.mxu0 %v712_v2 }
  0x2e   :  { %491 = vmatpush3.bf16.msra.mxu0 %v61_v5 }
  0x2f   :  { %492 = vmatprep.subr.bf16.mxu0 %v712_v2 }
  0x32   :  { %493 = vmatpush3.bf16.msra.mxu0 %v62_v6 }
  0x33   :  { %494 = vmatprep.subr.bf16.mxu0 %v712_v2 }
  0x36   :  { %495 = vmatpush3.bf16.msra.mxu0 %v63_v7 }
  0x37   :  { %496 = vmatprep.subr.bf16.mxu0 %v712_v2 }
  0x3a   :  { %497 = vmatpush3.bf16.msra.mxu0 %v64_v8 }
  0x3b   :  { %498 = vmatprep.subr.bf16.mxu0 %v712_v2 }
  0x3e   :  { %499 = vmatpush3.bf16.msra.mxu0 %v65_v9 }
  0x3f   :  { %500 = vmatprep.subr.bf16.mxu0 %v712_v2 }
  0x42   :  { %501 = vmatpush3.bf16.msra.mxu0 %v66_v10 }
  0x45   :  { %503 = vmatmul.mubr.bf16.vlgmr.msra.gmra.mrb[0].mxu0 %v434_v11 }
 0x118   :  { %v114_v13 = vpop.f32.mrb[0].mxu0 }
 0x119   :  { %v115_v14 = vadd.f32 %v433_v12, %v114_v13  ;;  %v504_v15 = vpop.f32.mrb[1].mxu0 }
 0x11a   :  { %v117_v16 = vpop.f32.mrb[2].mxu0 }
 0x11b   :  { %v123_v17 = vmul.f32 0.01, %v115_v14  ;;  %v118_v18 = vadd.f32 %v433_v12, %v117_v16  ;;  %v505_v19 = vpop.f32.mrb[3].mxu0  ;;  %vm121_vm1 = vcmp.gt.f32.partialorder %v115_v14, 0.0 }
 0x11d   :  { %vm122_vm2 = vcmp.gt.f32.partialorder %v118_v18, 0.0  ;;  %v124_v20 = vmul.f32 0.01, %v118_v18  ;;  %v125_v21 = vsel %vm121_vm1, %v115_v14, %v123_v17 }
 0x11f   :  { %v126_v22 = vsel %vm122_vm2, %v118_v18, %v124_v20 }
 0x120   :  { %v127_v23 = vpack.c.bf16 %v126_v22, %v125_v21 }
 0x121   :  { %702 = dma.done.wait [#allocation3 + $0x1], 1024 }
 0x122   :  { %703 = vsyncadd [#allocation3 + $0x1], 4294966272  ;;  %506 = vmatprep.subr.bf16.mxu1 %v712_v2  ;;  %522 = vmatprep.mubr.msk.bf16.mxu1 %vm713_vm0, %v712_v2  ;;  %v141_v24 = vld [vmem:[#allocation2 + $0x40] sm:$0xff]  ;;  %v142_v25 = vld [vmem:[#allocation2 + $0x48] sm:$0xff]  ;;  %s656_s22 = scalar_lea.hbm %s973_s7, 1024 }
 0x123   :  { %507 = vmatpush3.bf16.msra.mxu1 %v141_v24  ;;  %v143_v26 = vld [vmem:[#allocation2 + $0x50] sm:$0xff]  ;;  %v144_v27 = vld [vmem:[#allocation2 + $0x58] sm:$0xff]  ;;  %v145_v28 = vld [vmem:[#allocation2 + $0x60] sm:$0xff]  ;;  %p657_p5 = scmp.ne.s32.totalorder %s973_s7, %s656_s22  ;;  %p660_p6 = scmp.lt.u32.totalorder %s656_s22, %s973_s7 }
 0x124   :  { %508 = vmatprep.subr.bf16.mxu1 %v712_v2  ;;  %v146_v29 = vld [vmem:[#allocation2 + $0x68] sm:$0xff]  ;;  %v147_v30 = vld [vmem:[#allocation2 + $0x70] sm:$0xff]  ;;  %v148_v31 = vld [vmem:[#allocation2 + $0x78] sm:$0xff] }
 0x125   :  { %p662_p8 = pnand %p660_p6, %p657_p5 }
 0x127   :  { %665 = shalt.err (!%p662_p8)  }
 0x128   :  { %677 = shalt.err (!%p630_p1)  }
 0x129   :  { %214 = dma.hbm_to_vmem [thread:$0]  %s973_s7, 1024, %s786_s24, [#allocation3 + $0x1]  ;;  %509 = vmatpush3.bf16.msra.mxu1 %v142_v25  ;;  %v435_v32 = vld [vmem:[%s970_s4] ss:$0 sm:$0xff] }
 0x12a   :  { %510 = vmatprep.subr.bf16.mxu1 %v712_v2 }
 0x12d   :  { %511 = vmatpush3.bf16.msra.mxu1 %v143_v26 }
 0x12e   :  { %512 = vmatprep.subr.bf16.mxu1 %v712_v2 }
 0x131   :  { %513 = vmatpush3.bf16.msra.mxu1 %v144_v27 }
 0x132   :  { %514 = vmatprep.subr.bf16.mxu1 %v712_v2 }
 0x135   :  { %515 = vmatpush3.bf16.msra.mxu1 %v145_v28 }
 0x136   :  { %516 = vmatprep.subr.bf16.mxu1 %v712_v2 }
 0x139   :  { %517 = vmatpush3.bf16.msra.mxu1 %v146_v29 }
 0x13a   :  { %518 = vmatprep.subr.bf16.mxu1 %v712_v2 }
 0x13d   :  { %519 = vmatpush3.bf16.msra.mxu1 %v147_v30 }
 0x13e   :  { %520 = vmatprep.subr.bf16.mxu1 %v712_v2 }
 0x141   :  { %521 = vmatpush3.bf16.msra.mxu1 %v148_v31 }
 0x144   :  { %523 = vmatmul.mubr.bf16.vlgmr.msra.gmra.mrb[0].mxu1 %v127_v23 }
 0x217   :  { %v190_v33 = vpop.f32.mrb[0].mxu1 }
 0x218   :  { %v191_v34 = vadd.f32 %v435_v32, %v190_v33  ;;  %v524_v35 = vpop.f32.mrb[1].mxu1 }
 0x219   :  { %v193_v36 = vpop.f32.mrb[2].mxu1 }
 0x21a   :  { %v199_v37 = vmul.f32 0.01, %v191_v34  ;;  %v194_v38 = vadd.f32 %v435_v32, %v193_v36  ;;  %v525_v39 = vpop.f32.mrb[3].mxu1  ;;  %vm197_vm3 = vcmp.gt.f32.partialorder %v191_v34, 0.0 }
 0x21c   :  { %vm198_vm4 = vcmp.gt.f32.partialorder %v194_v38, 0.0  ;;  %v200_v40 = vmul.f32 0.01, %v194_v38  ;;  %v201_v41 = vsel %vm197_vm3, %v191_v34, %v199_v37 }
 0x21e   :  { %v202_v42 = vsel %vm198_vm4, %v194_v38, %v200_v40 }
 0x21f   :  { %v203_v43 = vpack.c.bf16 %v202_v42, %v201_v41 }
 0x220   :  { %704 = dma.done.wait [#allocation3], 1024 }
 0x221   :  { %705 = vsyncadd [#allocation3], 4294966272  ;;  %526 = vmatprep.subr.bf16.mxu0 %v712_v2  ;;  %542 = vmatprep.mubr.msk.bf16.mxu0 %vm713_vm0, %v712_v2  ;;  %v217_v44 = vld [vmem:[#allocation2] sm:$0xff]  ;;  %v218_v45 = vld [vmem:[#allocation2 + $0x8] sm:$0xff]  ;;  %s678_s27 = scalar_lea.hbm %s975_s9, 1024 }
 0x222   :  { %527 = vmatpush3.bf16.msra.mxu0 %v217_v44  ;;  %v219_v46 = vld [vmem:[#allocation2 + $0x10] sm:$0xff]  ;;  %v220_v47 = vld [vmem:[#allocation2 + $0x18] sm:$0xff]  ;;  %v221_v48 = vld [vmem:[#allocation2 + $0x20] sm:$0xff]  ;;  %p679_p9 = scmp.ne.s32.totalorder %s975_s9, %s678_s27  ;;  %p682_p10 = scmp.lt.u32.totalorder %s678_s27, %s975_s9 }
 0x223   :  { %528 = vmatprep.subr.bf16.mxu0 %v712_v2  ;;  %v222_v49 = vld [vmem:[#allocation2 + $0x28] sm:$0xff]  ;;  %v223_v50 = vld [vmem:[#allocation2 + $0x30] sm:$0xff]  ;;  %v224_v51 = vld [vmem:[#allocation2 + $0x38] sm:$0xff] }
 0x224   :  { %p684_p11 = pnand %p682_p10, %p679_p9 }
 0x226   :  { %687 = shalt.err (!%p684_p11)  }
 0x227   :  { %699 = shalt.err (!%p802_p7)  }
 0x228   :  { %290 = dma.hbm_to_vmem [thread:$0]  %s975_s9, 1024, %s784_s18, [#allocation3]  ;;  %529 = vmatpush3.bf16.msra.mxu0 %v218_v45  ;;  %v436_v52 = vld [vmem:[%s972_s6] ss:$0 sm:$0xff] }
 0x229   :  { %530 = vmatprep.subr.bf16.mxu0 %v712_v2 }
 0x22c   :  { %531 = vmatpush3.bf16.msra.mxu0 %v219_v46 }
 0x22d   :  { %532 = vmatprep.subr.bf16.mxu0 %v712_v2 }
 0x230   :  { %533 = vmatpush3.bf16.msra.mxu0 %v220_v47 }
 0x231   :  { %534 = vmatprep.subr.bf16.mxu0 %v712_v2 }
 0x234   :  { %535 = vmatpush3.bf16.msra.mxu0 %v221_v48 }
 0x235   :  { %536 = vmatprep.subr.bf16.mxu0 %v712_v2 }
 0x238   :  { %537 = vmatpush3.bf16.msra.mxu0 %v222_v49 }
 0x239   :  { %538 = vmatprep.subr.bf16.mxu0 %v712_v2 }
 0x23c   :  { %539 = vmatpush3.bf16.msra.mxu0 %v223_v50 }
 0x23d   :  { %540 = vmatprep.subr.bf16.mxu0 %v712_v2 }
 0x240   :  { %541 = vmatpush3.bf16.msra.mxu0 %v224_v51 }
 0x243   :  { %543 = vmatmul.mubr.bf16.vlgmr.msra.gmra.mrb[4].mxu0 %v203_v43 }
 0x316   :  { %v266_v53 = vpop.f32.mrb[4].mxu0 }
 0x317   :  { %v267_v54 = vadd.f32 %v436_v52, %v266_v53  ;;  %v544_v55 = vpop.f32.mrb[5].mxu0 }
 0x318   :  { %v269_v56 = vpop.f32.mrb[6].mxu0 }
 0x319   :  { %v275_v57 = vmul.f32 0.01, %v267_v54  ;;  %v270_v58 = vadd.f32 %v436_v52, %v269_v56  ;;  %v545_v59 = vpop.f32.mrb[7].mxu0  ;;  %vm273_vm5 = vcmp.gt.f32.partialorder %v267_v54, 0.0 }
 0x31b   :  { %vm274_vm6 = vcmp.gt.f32.partialorder %v270_v58, 0.0  ;;  %v276_v60 = vmul.f32 0.01, %v270_v58  ;;  %v277_v61 = vsel %vm273_vm5, %v267_v54, %v275_v57 }
 0x31d   :  { %v278_v62 = vsel %vm274_vm6, %v270_v58, %v276_v60 }
 0x31e   :  { %v279_v63 = vpack.c.bf16 %v278_v62, %v277_v61 }
 0x31f   :  { %706 = dma.done.wait [#allocation3 + $0x1], 1024 }
 0x320   :  { %707 = vsyncadd [#allocation3 + $0x1], 4294966272  ;;  %546 = vmatprep.subr.bf16.mxu1 %v712_v2  ;;  %562 = vmatprep.mubr.msk.bf16.mxu1 %vm713_vm0, %v712_v2  ;;  %v293_v0 = vld [vmem:[#allocation2 + $0x40] sm:$0xff]  ;;  %v294_v1 = vld [vmem:[#allocation2 + $0x48] sm:$0xff] }
 0x321   :  { %547 = vmatpush3.bf16.msra.mxu1 %v293_v0  ;;  %v295_v3 = vld [vmem:[#allocation2 + $0x50] sm:$0xff]  ;;  %v296_v4 = vld [vmem:[#allocation2 + $0x58] sm:$0xff]  ;;  %v297_v5 = vld [vmem:[#allocation2 + $0x60] sm:$0xff] }
 0x322   :  { %548 = vmatprep.subr.bf16.mxu1 %v712_v2  ;;  %v298_v6 = vld [vmem:[#allocation2 + $0x68] sm:$0xff]  ;;  %v299_v7 = vld [vmem:[#allocation2 + $0x70] sm:$0xff]  ;;  %v300_v8 = vld [vmem:[#allocation2 + $0x78] sm:$0xff] }
 0x323   :  { %v437_v9 = vld [vmem:[%s974_s8] ss:$0 sm:$0xff] }
 0x325   :  { %549 = vmatpush3.bf16.msra.mxu1 %v294_v1 }
 0x326   :  { %550 = vmatprep.subr.bf16.mxu1 %v712_v2 }
 0x329   :  { %551 = vmatpush3.bf16.msra.mxu1 %v295_v3 }
 0x32a   :  { %552 = vmatprep.subr.bf16.mxu1 %v712_v2 }
 0x32d   :  { %553 = vmatpush3.bf16.msra.mxu1 %v296_v4 }
 0x32e   :  { %554 = vmatprep.subr.bf16.mxu1 %v712_v2 }
 0x331   :  { %555 = vmatpush3.bf16.msra.mxu1 %v297_v5 }
 0x332   :  { %556 = vmatprep.subr.bf16.mxu1 %v712_v2 }
 0x335   :  { %557 = vmatpush3.bf16.msra.mxu1 %v298_v6 }
 0x336   :  { %558 = vmatprep.subr.bf16.mxu1 %v712_v2 }
 0x339   :  { %559 = vmatpush3.bf16.msra.mxu1 %v299_v7 }
 0x33a   :  { %560 = vmatprep.subr.bf16.mxu1 %v712_v2 }
 0x33d   :  { %561 = vmatpush3.bf16.msra.mxu1 %v300_v8 }
 0x340   :  { %563 = vmatmul.mubr.bf16.vlgmr.msra.gmra.mrb[4].mxu1 %v279_v63 }
 0x413   :  { %v342_v10 = vpop.f32.mrb[4].mxu1 }
 0x414   :  { %v343_v11 = vadd.f32 %v437_v9, %v342_v10  ;;  %v564_v12 = vpop.f32.mrb[5].mxu1 }
 0x415   :  { %v345_v13 = vpop.f32.mrb[6].mxu1 }
 0x416   :  { %v351_v14 = vmul.f32 0.01, %v343_v11  ;;  %v346_v15 = vadd.f32 %v437_v9, %v345_v13  ;;  %v565_v16 = vpop.f32.mrb[7].mxu1  ;;  %vm349_vm7 = vcmp.gt.f32.partialorder %v343_v11, 0.0 }
 0x418   :  { %vm350_vm8 = vcmp.gt.f32.partialorder %v346_v15, 0.0  ;;  %v352_v17 = vmul.f32 0.01, %v346_v15  ;;  %v353_v18 = vsel %vm349_vm7, %v343_v11, %v351_v14 }
 0x41a   :  { %v354_v19 = vsel %vm350_vm8, %v346_v15, %v352_v17 }
 0x41b   :  { %v355_v20 = vpack.c.bf16 %v354_v19, %v353_v18 }
 0x41c   :  { %708 = dma.done.wait [#allocation3], 1024 }
 0x41d   :  { %709 = vsyncadd [#allocation3], 4294966272  ;;  %566 = vmatprep.subr.bf16.mxu0 %v712_v2  ;;  %582 = vmatprep.mubr.msk.bf16.mxu0 %vm713_vm0, %v712_v2  ;;  %v358_v21 = vld [vmem:[#allocation2] sm:$0xff]  ;;  %v359_v22 = vld [vmem:[#allocation2 + $0x8] sm:$0xff] }
 0x41e   :  { %567 = vmatpush3.bf16.msra.mxu0 %v358_v21  ;;  %v360_v23 = vld [vmem:[#allocation2 + $0x10] sm:$0xff]  ;;  %v361_v24 = vld [vmem:[#allocation2 + $0x18] sm:$0xff]  ;;  %v362_v25 = vld [vmem:[#allocation2 + $0x20] sm:$0xff] }
 0x41f   :  { %568 = vmatprep.subr.bf16.mxu0 %v712_v2  ;;  %v363_v26 = vld [vmem:[#allocation2 + $0x28] sm:$0xff]  ;;  %v364_v27 = vld [vmem:[#allocation2 + $0x30] sm:$0xff]  ;;  %v365_v28 = vld [vmem:[#allocation2 + $0x38] sm:$0xff] }
 0x420   :  { %v438_v29 = vld [vmem:[%s976_s10] ss:$0 sm:$0xff] }
 0x422   :  { %569 = vmatpush3.bf16.msra.mxu0 %v359_v22 }
 0x423   :  { %570 = vmatprep.subr.bf16.mxu0 %v712_v2 }
 0x426   :  { %571 = vmatpush3.bf16.msra.mxu0 %v360_v23 }
 0x427   :  { %572 = vmatprep.subr.bf16.mxu0 %v712_v2 }
 0x42a   :  { %573 = vmatpush3.bf16.msra.mxu0 %v361_v24 }
 0x42b   :  { %574 = vmatprep.subr.bf16.mxu0 %v712_v2 }
 0x42e   :  { %575 = vmatpush3.bf16.msra.mxu0 %v362_v25 }
 0x42f   :  { %576 = vmatprep.subr.bf16.mxu0 %v712_v2 }
 0x432   :  { %577 = vmatpush3.bf16.msra.mxu0 %v363_v26 }
 0x433   :  { %578 = vmatprep.subr.bf16.mxu0 %v712_v2 }
 0x436   :  { %579 = vmatpush3.bf16.msra.mxu0 %v364_v27 }
 0x437   :  { %580 = vmatprep.subr.bf16.mxu0 %v712_v2 }
 0x43a   :  { %581 = vmatpush3.bf16.msra.mxu0 %v365_v28 }
 0x43d   :  { %583 = vmatmul.mubr.bf16.vlgmr.msra.gmra.mrb[8].mxu0 %v355_v20 }
 0x510   :  { %v407_v30 = vpop.f32.mrb[8].mxu0 }
 0x511   :  { %v408_v31 = vadd.f32 %v438_v29, %v407_v30  ;;  %v584_v32 = vpop.f32.mrb[9].mxu0 }
 0x512   :  { %v410_v33 = vpop.f32.mrb[10].mxu0 }
 0x513   :  { %414 = vst [vmem:[%s977_s11] sm:$0xff] %v408_v31  ;;  %v411_v34 = vadd.f32 %v438_v29, %v410_v33  ;;  %v585_v35 = vpop.f32.mrb[11].mxu0 }
 0x515   :  { %415 = vst [vmem:[%s977_s11 + $0x8] sm:$0xff] %v411_v34 }
 0x516   :  { %420 = vsyncmov [#allocation3] }
 0x519   :  { %s421_s21 = vpop.sfrf %420 }
 0x51a   :  { %p439_p7 = scmp.ne.s32.totalorder %s421_s21, 0 }
 0x51c   :  { %425 = shalt.err (%p439_p7)  }
 0x51d   :  { %427 = vsyncmov [#allocation3 + $0x1] }
 0x520   :  { %s428_s10 = vpop.sfrf %427 }
 0x521   :  { %p440_p12 = scmp.ne.s32.totalorder %s428_s10, 0 }
 0x523   :  { %432 = shalt.err (%p440_p12)  }

</bundles_post_ra>
